<compile_context>
chip_gen: v6e
topology: v6e:2x2x1
jax: 0.10.0
libtpu: 0.0.40
codegen_flags: <defaults>
</compile_context>

<pallas_src>
import functools

import jax
import jax.numpy as jnp
from jax.experimental import pallas as pl
from jax.experimental.pallas import tpu as pltpu


def _round_up(x, m):
    return ((x + m - 1) // m) * m


def _complex_conv_kernel(x_ref, w_ref, b_ref, o_ref, *, tap_offsets, l_out):
    # x_ref: (1, 2Cp, L_in)   bf16  channel-stacked, spatially padded, flattened image
    # w_ref: (KH*KW, 2Op, 2Cp) bf16 per-tap block weights [[wr,-wi],[wi,wr]]
    # b_ref: (2Op, 1)          f32  fused bias [br-bi, br+bi]
    # o_ref: (1, 2Op, l_out)   f32  transposed output (already NCHW after crop)
    n_out = o_ref.shape[1]
    acc = jnp.zeros((n_out, l_out), dtype=jnp.float32)
    for t, off in enumerate(tap_offsets):          # unrolled: KH*KW small matmuls
        x_tap = x_ref[0, :, pl.ds(off, l_out)]     # (2Cp, l_out) bf16, shifted slab
        w_tap = w_ref[t]                           # (2Op, 2Cp)   bf16
        acc = acc + jnp.dot(w_tap, x_tap, preferred_element_type=jnp.float32)
    o_ref[0] = acc + b_ref[...]                    # broadcast bias over lanes


def complex_conv2d(x_real, x_imag, w_real, w_imag, b_real, b_imag,
                   *, stride=1, padding=1):
    # TODO(synk): stride > 1 not implemented (module default is stride=1).
    assert stride == 1, "only stride=1 implemented"
    n, c, h, w = x_real.shape
    o, ci, kh, kw = w_real.shape
    assert ci == c

    hp, wp = h + 2 * padding, w + 2 * padding
    h_out, w_out = hp - kh + 1, wp - kw + 1

    c2, o2 = 2 * c, 2 * o
    c2p = _round_up(c2, 16)      # bf16 sublane packing for the streamed input
    o2p = _round_up(o2, 8)       # f32 sublane tiling for the output / accumulator

    # ---- input: stack [real, imag] on channels, pad spatially, flatten HxW ----
    xs = jnp.concatenate([x_real, x_imag], axis=1).astype(jnp.float32)  # (N,2C,H,W)
    xs = jnp.pad(xs, ((0, 0), (0, 0), (padding, padding), (padding, padding)))
    xs = xs.reshape(n, c2, hp * wp)

    l_out = _round_up(h_out * wp, 128)         # lane-dense "virtual" output width
    max_off = (kh - 1) * wp + (kw - 1)         # largest tap shift
    l_in = _round_up(max_off + l_out, 128)     # >= hp*wp always
    xs = jnp.pad(xs, ((0, 0), (0, c2p - c2), (0, l_in - hp * wp)))
    xs = xs.astype(jnp.bfloat16)                                        # (N,2Cp,L_in)

    # ---- weights: per-tap block matrix [[wr, -wi], [wi, wr]] (transposed) ------
    wr = w_real.astype(jnp.float32)
    wi = w_imag.astype(jnp.float32)
    top = jnp.concatenate([wr, -wi], axis=1)      # real-output rows
    bot = jnp.concatenate([wi, wr], axis=1)       # imag-output rows
    wt = jnp.concatenate([top, bot], axis=0)      # (2O, 2C, KH, KW)
    wt = wt.transpose(2, 3, 0, 1).reshape(kh * kw, o2, c2)
    wt = jnp.pad(wt, ((0, 0), (0, o2p - o2), (0, c2p - c2))).astype(jnp.bfloat16)

    bias = jnp.concatenate([b_real - b_imag, b_real + b_imag]).astype(jnp.float32)
    bias = jnp.pad(bias, (0, o2p - o2)).reshape(o2p, 1)

    tap_offsets = tuple(dh * wp + dw for dh in range(kh) for dw in range(kw))
    kernel = functools.partial(_complex_conv_kernel,
                               tap_offsets=tap_offsets, l_out=l_out)

    # TODO(synk): for very large H*W a spatial grid axis with halo blocks would be
    # needed; one image per grid step is fine at these sizes.
    out = pl.pallas_call(
        kernel,
        out_shape=jax.ShapeDtypeStruct((n, o2p, l_out), jnp.float32),
        grid_spec=pltpu.PrefetchScalarGridSpec(
            num_scalar_prefetch=0,
            grid=(n,),
            in_specs=[pl.BlockSpec((1, c2p, l_in), lambda b: (b, 0, 0)),
                      pl.BlockSpec((kh * kw, o2p, c2p), lambda b: (0, 0, 0)),
                      pl.BlockSpec((o2p, 1), lambda b: (0, 0))],
            out_specs=pl.BlockSpec((1, o2p, l_out), lambda b: (b, 0, 0))),
        compiler_params=pltpu.CompilerParams(
            dimension_semantics=("parallel",),
            vmem_limit_bytes=32 * 1024 * 1024),
    )(xs, wt, bias)

    # crop the virtual width (Wp) back to W_out; layout is already (N, 2O, H, W)
    out = out[:, :o2, : h_out * wp].reshape(n, o2, h_out, wp)[:, :, :, :w_out]
    return jax.lax.complex(out[:, :o], out[:, o:o2])


def _ref_conv(x, wgt, b):
    y = jax.lax.conv_general_dilated(
        x, wgt, window_strides=(1, 1), padding=((1, 1), (1, 1)),
        dimension_numbers=("NCHW", "OIHW", "NCHW"))
    return y + b[None, :, None, None]


if __name__ == "__main__":
    key = jax.random.PRNGKey(0)
    kx_r, kx_i, kw_r, kw_i, kb_r, kb_i = jax.random.split(key, 6)

    N, Cin, Cout, H, W, K = 2, 4, 8, 16, 16, 3

    x_real = jax.random.normal(kx_r, (N, Cin, H, W), dtype=jnp.float32)
    x_imag = jax.random.normal(kx_i, (N, Cin, H, W), dtype=jnp.float32)

    # deterministic "Conv2d"-style init (uniform in +/- 1/sqrt(fan_in))
    fan_in = Cin * K * K
    bound = 1.0 / (fan_in ** 0.5)
    w_real = jax.random.uniform(kw_r, (Cout, Cin, K, K), jnp.float32, -bound, bound)
    w_imag = jax.random.uniform(kw_i, (Cout, Cin, K, K), jnp.float32, -bound, bound)
    b_real = jax.random.uniform(kb_r, (Cout,), jnp.float32, -bound, bound)
    b_imag = jax.random.uniform(kb_i, (Cout,), jnp.float32, -bound, bound)

    out = complex_conv2d(x_real, x_imag, w_real, w_imag, b_real, b_imag)
    out = jax.block_until_ready(out)

    # reference check against plain-JAX conv (f32)
    ref_real = _ref_conv(x_real, w_real, b_real) - _ref_conv(x_imag, w_imag, b_imag)
    ref_imag = _ref_conv(x_imag, w_real, b_real) + _ref_conv(x_real, w_imag, b_imag)
    assert out.shape == (N, Cout, H, W) and jnp.iscomplexobj(out)
    # bf16 streamed operands (f32 accumulation) -> loosened tolerance vs f32 ref
    assert jnp.allclose(out.real, ref_real, rtol=5e-2, atol=5e-2)
    assert jnp.allclose(out.imag, ref_imag, rtol=5e-2, atol=5e-2)

    print("KERNEL_OK")
</pallas_src>

<mosaic_0001>
module attributes {stable_mosaic.version = 11 : i64} {
  func.func @_complex_conv_kernel(%arg0: i32, %arg1: memref<1x16x512xbf16, #tpu.memory_space<vmem>>, %arg2: memref<9x16x16xbf16, #tpu.memory_space<vmem>>, %arg3: memref<16x1xf32, #tpu.memory_space<vmem>>, %arg4: memref<1x16x384xf32, #tpu.memory_space<vmem>>) attributes {dimension_semantics = [#tpu.dimension_semantics<parallel>], iteration_bounds = array<i64: 2>, scalar_prefetch = 0 : i64, scratch_operands = 0 : i64, tpu.core_type = #tpu.core_type<tc>, window_params = [{transform_indices = @transform_0, window_bounds = array<i64: 1, 16, 512>}, {pipeline_mode = #tpu.pipeline_mode<synchronous>, transform_indices = @transform_1, window_bounds = array<i64: 9, 16, 16>}, {pipeline_mode = #tpu.pipeline_mode<synchronous>, transform_indices = @transform_2, window_bounds = array<i64: 16, 1>}, {transform_indices = @transform_3, window_bounds = array<i64: 1, 16, 384>}]} {
    %cst = arith.constant 0.000000e+00 : f32
    %0 = vector.broadcast %cst : f32 to vector<16x384xf32>
    %c0 = arith.constant 0 : index
    %c0_0 = arith.constant 0 : index
    %c0_1 = arith.constant 0 : index
    %1 = vector.load %arg1[%c0, %c0_0, %c0_1] : memref<1x16x512xbf16, #tpu.memory_space<vmem>>, vector<1x16x384xbf16>
    %2 = vector.shape_cast %1 : vector<1x16x384xbf16> to vector<16x384xbf16>
    %c0_2 = arith.constant 0 : index
    %c0_3 = arith.constant 0 : index
    %c0_4 = arith.constant 0 : index
    %3 = vector.load %arg2[%c0_2, %c0_3, %c0_4] : memref<9x16x16xbf16, #tpu.memory_space<vmem>>, vector<1x16x16xbf16>
    %4 = vector.shape_cast %3 : vector<1x16x16xbf16> to vector<16x16xbf16>
    %cst_5 = arith.constant dense<0.000000e+00> : vector<16x384xf32>
    %5 = tpu.matmul %4, %2, %cst_5 {dimension_numbers = #tpu.dot_dimension_numbers<[1], [0], [0], [1], [0, 0, 1, 1], [], []>} : vector<16x16xbf16>, vector<16x384xbf16>, vector<16x384xf32> -> vector<16x384xf32>
    %6 = arith.addf %0, %5 : vector<16x384xf32>
    %c0_6 = arith.constant 0 : index
    %c0_7 = arith.constant 0 : index
    %c1 = arith.constant 1 : index
    %7 = vector.load %arg1[%c0_6, %c0_7, %c1] : memref<1x16x512xbf16, #tpu.memory_space<vmem>>, vector<1x16x384xbf16>
    %8 = vector.shape_cast %7 : vector<1x16x384xbf16> to vector<16x384xbf16>
    %c1_8 = arith.constant 1 : index
    %c0_9 = arith.constant 0 : index
    %c0_10 = arith.constant 0 : index
    %9 = vector.load %arg2[%c1_8, %c0_9, %c0_10] : memref<9x16x16xbf16, #tpu.memory_space<vmem>>, vector<1x16x16xbf16>
    %10 = vector.shape_cast %9 : vector<1x16x16xbf16> to vector<16x16xbf16>
    %cst_11 = arith.constant dense<0.000000e+00> : vector<16x384xf32>
    %11 = tpu.matmul %10, %8, %cst_11 {dimension_numbers = #tpu.dot_dimension_numbers<[1], [0], [0], [1], [0, 0, 1, 1], [], []>} : vector<16x16xbf16>, vector<16x384xbf16>, vector<16x384xf32> -> vector<16x384xf32>
    %12 = arith.addf %6, %11 : vector<16x384xf32>
    %c0_12 = arith.constant 0 : index
    %c0_13 = arith.constant 0 : index
    %c2 = arith.constant 2 : index
    %13 = vector.load %arg1[%c0_12, %c0_13, %c2] : memref<1x16x512xbf16, #tpu.memory_space<vmem>>, vector<1x16x384xbf16>
    %14 = vector.shape_cast %13 : vector<1x16x384xbf16> to vector<16x384xbf16>
    %c2_14 = arith.constant 2 : index
    %c0_15 = arith.constant 0 : index
    %c0_16 = arith.constant 0 : index
    %15 = vector.load %arg2[%c2_14, %c0_15, %c0_16] : memref<9x16x16xbf16, #tpu.memory_space<vmem>>, vector<1x16x16xbf16>
    %16 = vector.shape_cast %15 : vector<1x16x16xbf16> to vector<16x16xbf16>
    %cst_17 = arith.constant dense<0.000000e+00> : vector<16x384xf32>
    %17 = tpu.matmul %16, %14, %cst_17 {dimension_numbers = #tpu.dot_dimension_numbers<[1], [0], [0], [1], [0, 0, 1, 1], [], []>} : vector<16x16xbf16>, vector<16x384xbf16>, vector<16x384xf32> -> vector<16x384xf32>
    %18 = arith.addf %12, %17 : vector<16x384xf32>
    %c0_18 = arith.constant 0 : index
    %c0_19 = arith.constant 0 : index
    %c18 = arith.constant 18 : index
    %19 = vector.load %arg1[%c0_18, %c0_19, %c18] : memref<1x16x512xbf16, #tpu.memory_space<vmem>>, vector<1x16x384xbf16>
    %20 = vector.shape_cast %19 : vector<1x16x384xbf16> to vector<16x384xbf16>
    %c3 = arith.constant 3 : index
    %c0_20 = arith.constant 0 : index
    %c0_21 = arith.constant 0 : index
    %21 = vector.load %arg2[%c3, %c0_20, %c0_21] : memref<9x16x16xbf16, #tpu.memory_space<vmem>>, vector<1x16x16xbf16>
    %22 = vector.shape_cast %21 : vector<1x16x16xbf16> to vector<16x16xbf16>
    %cst_22 = arith.constant dense<0.000000e+00> : vector<16x384xf32>
    %23 = tpu.matmul %22, %20, %cst_22 {dimension_numbers = #tpu.dot_dimension_numbers<[1], [0], [0], [1], [0, 0, 1, 1], [], []>} : vector<16x16xbf16>, vector<16x384xbf16>, vector<16x384xf32> -> vector<16x384xf32>
    %24 = arith.addf %18, %23 : vector<16x384xf32>
    %c0_23 = arith.constant 0 : index
    %c0_24 = arith.constant 0 : index
    %c19 = arith.constant 19 : index
    %25 = vector.load %arg1[%c0_23, %c0_24, %c19] : memref<1x16x512xbf16, #tpu.memory_space<vmem>>, vector<1x16x384xbf16>
    %26 = vector.shape_cast %25 : vector<1x16x384xbf16> to vector<16x384xbf16>
    %c4 = arith.constant 4 : index
    %c0_25 = arith.constant 0 : index
    %c0_26 = arith.constant 0 : index
    %27 = vector.load %arg2[%c4, %c0_25, %c0_26] : memref<9x16x16xbf16, #tpu.memory_space<vmem>>, vector<1x16x16xbf16>
    %28 = vector.shape_cast %27 : vector<1x16x16xbf16> to vector<16x16xbf16>
    %cst_27 = arith.constant dense<0.000000e+00> : vector<16x384xf32>
    %29 = tpu.matmul %28, %26, %cst_27 {dimension_numbers = #tpu.dot_dimension_numbers<[1], [0], [0], [1], [0, 0, 1, 1], [], []>} : vector<16x16xbf16>, vector<16x384xbf16>, vector<16x384xf32> -> vector<16x384xf32>
    %30 = arith.addf %24, %29 : vector<16x384xf32>
    %c0_28 = arith.constant 0 : index
    %c0_29 = arith.constant 0 : index
    %c20 = arith.constant 20 : index
    %31 = vector.load %arg1[%c0_28, %c0_29, %c20] : memref<1x16x512xbf16, #tpu.memory_space<vmem>>, vector<1x16x384xbf16>
    %32 = vector.shape_cast %31 : vector<1x16x384xbf16> to vector<16x384xbf16>
    %c5 = arith.constant 5 : index
    %c0_30 = arith.constant 0 : index
    %c0_31 = arith.constant 0 : index
    %33 = vector.load %arg2[%c5, %c0_30, %c0_31] : memref<9x16x16xbf16, #tpu.memory_space<vmem>>, vector<1x16x16xbf16>
    %34 = vector.shape_cast %33 : vector<1x16x16xbf16> to vector<16x16xbf16>
    %cst_32 = arith.constant dense<0.000000e+00> : vector<16x384xf32>
    %35 = tpu.matmul %34, %32, %cst_32 {dimension_numbers = #tpu.dot_dimension_numbers<[1], [0], [0], [1], [0, 0, 1, 1], [], []>} : vector<16x16xbf16>, vector<16x384xbf16>, vector<16x384xf32> -> vector<16x384xf32>
    %36 = arith.addf %30, %35 : vector<16x384xf32>
    %c0_33 = arith.constant 0 : index
    %c0_34 = arith.constant 0 : index
    %c36 = arith.constant 36 : index
    %37 = vector.load %arg1[%c0_33, %c0_34, %c36] : memref<1x16x512xbf16, #tpu.memory_space<vmem>>, vector<1x16x384xbf16>
    %38 = vector.shape_cast %37 : vector<1x16x384xbf16> to vector<16x384xbf16>
    %c6 = arith.constant 6 : index
    %c0_35 = arith.constant 0 : index
    %c0_36 = arith.constant 0 : index
    %39 = vector.load %arg2[%c6, %c0_35, %c0_36] : memref<9x16x16xbf16, #tpu.memory_space<vmem>>, vector<1x16x16xbf16>
    %40 = vector.shape_cast %39 : vector<1x16x16xbf16> to vector<16x16xbf16>
    %cst_37 = arith.constant dense<0.000000e+00> : vector<16x384xf32>
    %41 = tpu.matmul %40, %38, %cst_37 {dimension_numbers = #tpu.dot_dimension_numbers<[1], [0], [0], [1], [0, 0, 1, 1], [], []>} : vector<16x16xbf16>, vector<16x384xbf16>, vector<16x384xf32> -> vector<16x384xf32>
    %42 = arith.addf %36, %41 : vector<16x384xf32>
    %c0_38 = arith.constant 0 : index
    %c0_39 = arith.constant 0 : index
    %c37 = arith.constant 37 : index
    %43 = vector.load %arg1[%c0_38, %c0_39, %c37] : memref<1x16x512xbf16, #tpu.memory_space<vmem>>, vector<1x16x384xbf16>
    %44 = vector.shape_cast %43 : vector<1x16x384xbf16> to vector<16x384xbf16>
    %c7 = arith.constant 7 : index
    %c0_40 = arith.constant 0 : index
    %c0_41 = arith.constant 0 : index
    %45 = vector.load %arg2[%c7, %c0_40, %c0_41] : memref<9x16x16xbf16, #tpu.memory_space<vmem>>, vector<1x16x16xbf16>
    %46 = vector.shape_cast %45 : vector<1x16x16xbf16> to vector<16x16xbf16>
    %cst_42 = arith.constant dense<0.000000e+00> : vector<16x384xf32>
    %47 = tpu.matmul %46, %44, %cst_42 {dimension_numbers = #tpu.dot_dimension_numbers<[1], [0], [0], [1], [0, 0, 1, 1], [], []>} : vector<16x16xbf16>, vector<16x384xbf16>, vector<16x384xf32> -> vector<16x384xf32>
    %48 = arith.addf %42, %47 : vector<16x384xf32>
    %c0_43 = arith.constant 0 : index
    %c0_44 = arith.constant 0 : index
    %c38 = arith.constant 38 : index
    %49 = vector.load %arg1[%c0_43, %c0_44, %c38] : memref<1x16x512xbf16, #tpu.memory_space<vmem>>, vector<1x16x384xbf16>
    %50 = vector.shape_cast %49 : vector<1x16x384xbf16> to vector<16x384xbf16>
    %c8 = arith.constant 8 : index
    %c0_45 = arith.constant 0 : index
    %c0_46 = arith.constant 0 : index
    %51 = vector.load %arg2[%c8, %c0_45, %c0_46] : memref<9x16x16xbf16, #tpu.memory_space<vmem>>, vector<1x16x16xbf16>
    %52 = vector.shape_cast %51 : vector<1x16x16xbf16> to vector<16x16xbf16>
    %cst_47 = arith.constant dense<0.000000e+00> : vector<16x384xf32>
    %53 = tpu.matmul %52, %50, %cst_47 {dimension_numbers = #tpu.dot_dimension_numbers<[1], [0], [0], [1], [0, 0, 1, 1], [], []>} : vector<16x16xbf16>, vector<16x384xbf16>, vector<16x384xf32> -> vector<16x384xf32>
    %54 = arith.addf %48, %53 : vector<16x384xf32>
    %c0_48 = arith.constant 0 : index
    %c0_49 = arith.constant 0 : index
    %55 = vector.load %arg3[%c0_48, %c0_49] : memref<16x1xf32, #tpu.memory_space<vmem>>, vector<16x1xf32>
    %56 = vector.broadcast %55 : vector<16x1xf32> to vector<16x384xf32>
    %57 = arith.addf %54, %56 : vector<16x384xf32>
    %c0_50 = arith.constant 0 : index
    %c0_51 = arith.constant 0 : index
    %c0_52 = arith.constant 0 : index
    %58 = vector.load %arg4[%c0_50, %c0_51, %c0_52] : memref<1x16x384xf32, #tpu.memory_space<vmem>>, vector<1x16x384xf32>
    %59 = vector.shape_cast %58 : vector<1x16x384xf32> to vector<16x384xf32>
    %60 = vector.shape_cast %57 : vector<16x384xf32> to vector<1x16x384xf32>
    tpu.vector_store %arg4[%c0_50, %c0_51, %c0_52], %60 {strides = array<i32>} : memref<1x16x384xf32, #tpu.memory_space<vmem>>, vector<1x16x384xf32>,
    return
  }
  func.func @transform_0(%arg0: i32) -> (i32, i32, i32) {
    %c0_i32 = arith.constant 0 : i32
    %c0_i32_0 = arith.constant 0 : i32
    %c0_i32_1 = arith.constant 0 : i32
    return %arg0, %c0_i32, %c0_i32_0 : i32, i32, i32
  }
  func.func @transform_1(%arg0: i32) -> (i32, i32, i32) {
    %c0_i32 = arith.constant 0 : i32
    %c0_i32_0 = arith.constant 0 : i32
    %c0_i32_1 = arith.constant 0 : i32
    %c0_i32_2 = arith.constant 0 : i32
    return %c0_i32, %c0_i32_0, %c0_i32_1 : i32, i32, i32
  }
  func.func @transform_2(%arg0: i32) -> (i32, i32) {
    %c0_i32 = arith.constant 0 : i32
    %c0_i32_0 = arith.constant 0 : i32
    %c0_i32_1 = arith.constant 0 : i32
    return %c0_i32, %c0_i32_0 : i32, i32
  }
  func.func @transform_3(%arg0: i32) -> (i32, i32, i32) {
    %c0_i32 = arith.constant 0 : i32
    %c0_i32_0 = arith.constant 0 : i32
    %c0_i32_1 = arith.constant 0 : i32
    return %arg0, %c0_i32, %c0_i32_0 : i32, i32, i32
  }
}

</mosaic_0001>

<bundles_post_ra>
// kernel: tpu_custom_call.1
= control target key start
LH: loop header
LB: loop body
LE: loop exit
PB: predicated region body
PF: predicated region fallthrough
CT: control target
= control target key end

     0   :  { %8 = vsyncpa [#allocation3], 0  ;;  %s2051_s0 = inlined_call_operand.hbm [shape: bf16[2,16,512], index: 0, kind: input, shape index: {}]   ;;  %s2052_s1 = inlined_call_operand.hbm [shape: bf16[9,16,16], index: 1, kind: input, shape index: {}]   ;;  %s2053_s2 = inlined_call_operand.vmem [shape: f32[16,1], index: 2, kind: input, shape index: {}]   ;;  %s2054_s3 = inlined_call_operand.hbm [shape: f32[2,16,384], index: 3, kind: output, shape index: {}]  }
   0x1   :  { %10 = vsyncpa [#allocation3 + $0x1], 0 }
   0x2   :  { %11 = vsyncpa [#allocation6], 0 }
   0x3   :  { %12 = vsyncpa [#allocation4], 0 }
   0x4   :  { %14 = vsyncpa [#allocation4 + $0x1], 0  ;;  %s1761_s12 = smov 0   ;;  %s1763_s13 = smov 0  }
   0x5   :  { %s1765_s14 = smov 0   ;;  %s1767_s15 = smov 0  }
   0x6 LB: > { %s1782_s16 = sadd.s32 4294967295, %s1719_s15   ;;  %s1383_s17 = sadd.s32 4294967294, %s1719_s15   ;;  %s1719_s15 = sphi %s1767_s15, %s2076_s15   ;;  %s1715_s14 = sphi %s1765_s14, %s2075_s14   ;;  %s1711_s13 = sphi %s1763_s13, %s2074_s13   ;;  %s1707_s12 = sphi %s1761_s12, %s2073_s12  }
   0x7   : > { %p40_p0 = scmp.ne.s32.totalorder %s1711_s13, %s1707_s12  ;;  %p2055_p1 = scmp.eq.s32.totalorder %s1782_s16, 0 }
   0x8   : > { %p112_p3 = scmp.eq.s32.totalorder %s1383_s17, 1  ;;  %p1384_p5 = scmp.ge.s32.totalorder %s1719_s15, 1 }
   0x9   : > { %p1791_p4 = por %p2055_p1, %p40_p0  ;;  %p119_p7 = scmp.lt.s32.totalorder %s1719_s15, 3 }
   0xa   : > { %p1796_p6 = por %p112_p3, %p40_p0  ;;  %s1721_s21 = smov [#allocation5]  }
   0xb   : > { %s2059_s18 = scalar_select %p1791_p4, 1, 0 }
   0xc   : > { %s2060_s19 = scalar_select %p1796_p6, 1, 0 }
   0xd   : > { %p1801_p8 = pnand %p1384_p5, %p119_p7  ;;  %s131_s22 = sshll.u32 %s1721_s21, 4  ;;  %s132_s22 = int_to_ptr.vmem [resolvable:$true] %s131_s22 }
   0xe   : > { %s1815_s24 = sadd.s32 1, %s1719_s15   ;;  %s27_s25 = sadd.s32 1, %s1715_s14 }
   0xf   : > { %s2061_s20 = scalar_select %p1801_p8, 1, 0 }
  0x10   : > { %p1513_p9 = pneg %p1801_p8  ;;  %s24_s26 = ssub.s32 %s1719_s15, %s1815_s24 }
  0x11   : > { %s1608_s27 = scalar_lea.vmem %s132_s22, 1152  ;;  %p1616_p5 = scmp.lt.s32.totalorder %s132_s22, %s132_s22 }
  0x12   : > { %p1810_p11 = pnand %p1513_p9, %p2055_p1  ;;  %p1609_p13 = scmp.ne.s32.totalorder %s132_s22, %s1608_s27 }
  0x13   : > { %p1617_p7 = scmp.lt.s32.totalorder %s1608_s27, %s1608_s27 }
  0x14   : > { %p1599_p12 = pneg %p1810_p11 }
  0x15   : > { %p1618_p10 = por %p1617_p7, %p1616_p5 }
  0x16   : > { %p1611_p0 = pnand %p1609_p13, %p1599_p12 }
  0x18   : > { %p1612_p3 = pneg %p1611_p0 }
  0x1a   : > { %p1619_p2 = pnand %p1618_p10, %p1612_p3 }
  0x1c   : > { %1622 = shalt.err (!%p1619_p2)
}
  0x1d   : > { %s1722_s28 = smov 64   ;;  %s1723_s29 = smov 4  }
  0x1e   : > { %1516 = dma.hbm_to_vmem [thread:$0]  (!%p1810_p11), %s2052_s1, 1152, %s132_s22, [#allocation6], %s1722_s28, %s1722_s28, %s1723_s29  }
  0x1f   : > { %p25_p9 = scmp.eq.s32.totalorder %s24_s26, 0  ;;  %p34_p12 = scmp.ne.s32.totalorder %s1715_s14, %s1711_s13 }
  0x20   : > { %p35_p10 = scmp.eq.s32.totalorder %s1719_s15, 0  ;;  %p1526_p2 = scmp.lt.s32.totalorder %s1719_s15, 2 }
  0x21   : > { %s1832_s5 = scalar_select %p25_p9, %s1715_s14, %s27_s25  }
  0x22   : > { %p36_p13 = por %p35_p10, %p34_p12  ;;  %p2063_p0 = scmp.eq.s32.totalorder %s1782_s16, 1 }
  0x23   : > { %s148_s7 = sand.u32 1, %s1715_s14   ;;  %s1430_s8 = sshll.u32 %s1719_s15, 9 }
  0x24   : > { %p1836_p3 = por %p2063_p0, %p34_p12  ;;  %s1387_s9 = sshll.u32 %s148_s7, 5 }
  0x25   : > { %s1845_s17 = scalar_lea.hbm %s2051_s0, %s1430_s8  ;;  %s152_s21 = scalar_lea.vmem [#allocation2], %s1387_s9 }
  0x26   : > { %s2064_s6 = scalar_select %p1836_p3, 1, 0 }
  0x27   : > { %s159_s22 = sshll.u32 %s152_s21, 4  ;;  %p1847_p11 = pnand %p1526_p2, %p36_p13  ;;  %s1851_s22 = int_to_ptr.vmem [resolvable:$true] %s159_s22 }
  0x28   : > { %s1853_s25 = scalar_lea.sflag [#allocation3], %s148_s7  ;;  %s1623_s26 = scalar_lea.hbm %s1845_s17, 512 }
  0x29   : > { %p1624_p5 = scmp.ne.s32.totalorder %s1845_s17, %s1623_s26  ;;  %p1625_p7 = pneg %p1847_p11 }
  0x2a   : > { %s1628_s29 = scalar_lea.hbm %s2051_s0, 1024  ;;  %p1629_p10 = scmp.lt.s32.totalorder %s1845_s17, %s2051_s0 }
  0x2b   : > { %p1626_p9 = pnand %p1625_p7, %p1624_p5  ;;  %p1630_p2 = scmp.lt.s32.totalorder %s1628_s29, %s1623_s26 }
  0x2d   : > { %p1627_p12 = pneg %p1626_p9  ;;  %p1631_p13 = por %p1630_p2, %p1629_p10 }
  0x2f   : > { %p1632_p0 = pnand %p1631_p13, %p1627_p12 }
  0x31   : > { %1635 = shalt.err (!%p1632_p0)
}
  0x32   : > { %s1636_s7 = scalar_lea.vmem %s1851_s22, 512  ;;  %s1724_s8 = smov [#allocation2]  }
  0x33   : > { %p1637_p1 = scmp.ne.s32.totalorder %s1851_s22, %s1636_s7  ;;  %s1641_s9 = sshll.u32 %s1724_s8, 4  ;;  %s1642_s9 = int_to_ptr.vmem [resolvable:$false] %s1641_s9 }
  0x34   : > { %s1643_s10 = scalar_lea.vmem %s1642_s9, 1024  ;;  %p1644_p9 = scmp.lt.s32.totalorder %s1851_s22, %s1642_s9 }
  0x35   : > { %p1639_p6 = pnand %p1637_p1, %p1625_p7  ;;  %p1645_p3 = scmp.lt.s32.totalorder %s1643_s10, %s1636_s7 }
  0x37   : > { %p1640_p5 = pneg %p1639_p6  ;;  %p1646_p4 = por %p1645_p3, %p1644_p9 }
  0x39   : > { %p1647_p8 = pnand %p1646_p4, %p1640_p5 }
  0x3b   : > { %1650 = shalt.err (!%p1647_p8)
}
  0x3c   : > { %s1725_s11 = smov 256   ;;  %s1726_s21 = smov 16  }
  0x3d   : > { %1520 = dma.hbm_to_vmem [thread:$0]  (!%p1847_p11), %s1845_s17, 512, %s1851_s22, %s1853_s25, %s1725_s11, %s1725_s11, %s1726_s21  }
  0x3e   : > { %p2066_p1 = scmp.ne.s32.totalorder %s2061_s20, 0 }
  0x3f   : > { %s1877_s26 = sand.u32 (!%p2066_p1), 1, %s1711_s13   ;;  %p2067_p4 = scmp.ne.s32.totalorder (!%p2066_p1), %s2059_s18, 0 }
  0x40   : > { %171 = sbr.rel (%p2066_p1) target bundleno = 481 (0x1e1), region = 32  ;;  %s1391_s27 = sshll.u32 (!%p2066_p1), %s1877_s26, 5 }
  0x41   : > { %s174_s28 = scalar_lea.sflag (!%p2066_p1), [#allocation3], %s1877_s26  ;;  %s1881_s29 = scalar_lea.vmem (!%p2066_p1), [#allocation2], %s1391_s27 }
  0x45   : > { %1694 = dma.done.wait (%p2067_p4), %s174_s28, 512  }
  0x46   : > { %1696 = vsyncadd (%p2067_p4), %s174_s28, 4294966784  ;;  %p2068_p6 = scmp.eq.s32.totalorder %s1782_s16, 0 }
  0x48   : > { %1698 = dma.done.wait (%p2068_p6), [#allocation6], 1152   ;;  %p2069_p8 = pmov %p2068_p6 }
  0x49   : > { %v1727_v0 = vmov 0.0   ;;  %vm1728_vm0 = vmmov 0   ;;  %v1729_v1 = vmov 0   ;;  %v1898_v2 = vld [vmem:[%s1881_s29 + $0x4] ss:$16 sps:$4 sm:$0xff]   ;;  %s1730_s18 = smov 127  }
  0x4a   : > { %1700 = vsyncadd (%p2069_p8), [#allocation6], 4294966144  ;;  %1449 = vmatprep.subr.bf16.mxu1 %v1727_v0  ;;  %1451 = vmatprep.mubr.msk.bf16.mxu1 %vm1728_vm0, %v1727_v0  ;;  %v1901_v3 = vld [vmem:[%s1881_s29] ss:$16 sps:$4 sm:$0xff]   ;;  %v1584_v4 = vld [vmem:[%s1881_s29 + $0x8] ss:$16 sps:$4 sm:$0xff]  }
  0x4b   : > { %290 = vmatprep.mubr.bf16.mxu0 %v1729_v1  ;;  %1579 = vset.pattern.permute.xlu0 %v1729_v1  ;;  %v1586_v5 = vld [vmem:[%s1881_s29 + $0xc] ss:$16 sps:$4 sm:$0xff]   ;;  %s1731_s20 = smov 126   ;;  %s1732_s17 = smov 110   ;;  %v1262_v6 = vld [vmem:[%s2053_s2] sm:$0xff]  ;;  %vm247_vm1 = vcmask 1039360  }
  0x4c   : > { %1580 = vset.pattern.permute.xlu1 %v1729_v1  ;;  %241 = vrot.lane.b32.xlu0 %v1898_v2, %s1730_s18  ;;  %s1733_s22 = smov 109   ;;  %s1734_s23 = smov 108   ;;  %v1263_v7 = vld [vmem:[%s2053_s2 + $0x8] sm:$0xff]  ;;  %vm254_vm2 = vcmask 130048   ;;  %vm466_vm3 = vcmask 1031168   ;;  %v1589_v22 = vld [vmem:[#allocation5] sm:$0xff]  }
  0x4d   : > { %239 = vrot.lane.b32.xlu1 %v1901_v3, %s1730_s18  ;;  %s1735_s25 = smov 92   ;;  %s1736_s30 = smov 91   ;;  %v1587_v15 = vld [vmem:[#allocation5 + $0x8] sm:$0xff]   ;;  %vm582_vm4 = vcmask 900096   ;;  %v1590_v30 = vld [vmem:[#allocation5 + $0x10] sm:$0xff]   ;;  %vm698_vm5 = vcmask 891904  }
  0x4e   : > { %s1737_s4 = smov 90   ;;  %v1588_v16 = vld [vmem:[%s1881_s29 + $0x8] ss:$16 sps:$4 sm:$0xff]   ;;  %vm814_vm6 = vcmask 883712   ;;  %v1592_v46 = vld [vmem:[#allocation5 + $0x20] sm:$0xff]   ;;  %vm930_vm7 = vcmask 752640  }
  0x4f   : > { %v1591_v38 = vld [vmem:[#allocation5 + $0x18] sm:$0xff]   ;;  %v1593_v54 = vld [vmem:[#allocation5 + $0x28] sm:$0xff]   ;;  %vm1046_vm8 = vcmask 744448   ;;  %v1594_v62 = vld [vmem:[#allocation5 + $0x30] sm:$0xff]   ;;  %vm1162_vm9 = vcmask 736256   ;;  %s1503_s11 = smul.u32 48, %s1877_s26 }
  0x50   : > { %243 = vrot.lane.b32.xlu0 %v1584_v4, %s1730_s18  ;;  %s1504_s28 = smul.u32 768, %s1782_s16  ;;  %s1287_s16 = scalar_lea.sflag [#allocation4], %s1877_s26 }
  0x51   : > { %245 = vrot.lane.b32.xlu1 %v1586_v5, %s1730_s18  ;;  %s203_s21 = scalar_lea.vmem [#allocation7], %s1503_s11  ;;  %p2070_p11 = scmp.ne.s32.totalorder %s2064_s6, 0 }
  0x52   : > { %s1300_s27 = sshll.u32 %s203_s21, 4  ;;  %s2003_s27 = int_to_ptr.vmem [resolvable:$true] %s1300_s27 }
  0x54   : > { %460 = vrot.lane.b32.xlu0 %v1898_v2, %s1731_s20 }
  0x55   : > { %462 = vrot.lane.b32.xlu1 %v1584_v4, %s1731_s20 }
  0x58   : > { %458 = vrot.lane.b32.xlu0 %v1901_v3, %s1731_s20 }
  0x59   : > { %464 = vrot.lane.b32.xlu1 %v1586_v5, %s1731_s20  ;;  %s2008_s20 = scalar_lea.hbm %s2054_s3, %s1504_s28 }
  0x5c   : > { %576 = vrot.lane.b32.xlu0 %v1898_v2, %s1732_s17 }
  0x5d   : > { %578 = vrot.lane.b32.xlu1 %v1584_v4, %s1732_s17 }
  0x60   : > { %574 = vrot.lane.b32.xlu0 %v1901_v3, %s1732_s17 }
  0x61   : > { %580 = vrot.lane.b32.xlu1 %v1586_v5, %s1732_s17  ;;  %s1651_s17 = scalar_lea.vmem %s2003_s27, 768 }
  0x62   : > { %p1652_p3 = scmp.ne.s32.totalorder %s2003_s27, %s1651_s17 }
  0x64   : > { %692 = vrot.lane.b32.xlu0 %v1898_v2, %s1733_s22  ;;  %p1653_p7 = pnand %p1652_p3, %p2070_p11 }
  0x65   : > { %694 = vrot.lane.b32.xlu1 %v1584_v4, %s1733_s22 }
  0x66   : > { %p1654_p12 = pneg %p1653_p7 }
  0x68   : > { %690 = vrot.lane.b32.xlu0 %v1901_v3, %s1733_s22 }
  0x69   : > { %696 = vrot.lane.b32.xlu1 %v1586_v5, %s1733_s22  ;;  %s1738_s22 = smov [#allocation7]  }
  0x6c   : > { %808 = vrot.lane.b32.xlu0 %v1898_v2, %s1734_s23 }
  0x6d   : > { %810 = vrot.lane.b32.xlu1 %v1584_v4, %s1734_s23 }
  0x70   : > { %806 = vrot.lane.b32.xlu0 %v1901_v3, %s1734_s23 }
  0x71   : > { %812 = vrot.lane.b32.xlu1 %v1586_v5, %s1734_s23  ;;  %s1655_s23 = sshll.u32 %s1738_s22, 4  ;;  %s1656_s23 = int_to_ptr.vmem [resolvable:$false] %s1655_s23 }
  0x72   : > { %p1658_p10 = scmp.lt.s32.totalorder %s2003_s27, %s1656_s23 }
  0x74   : > { %924 = vrot.lane.b32.xlu0 %v1898_v2, %s1735_s25 }
  0x75   : > { %926 = vrot.lane.b32.xlu1 %v1584_v4, %s1735_s25 }
  0x78   : > { %922 = vrot.lane.b32.xlu0 %v1901_v3, %s1735_s25 }
  0x79   : > { %928 = vrot.lane.b32.xlu1 %v1586_v5, %s1735_s25  ;;  %s1657_s25 = scalar_lea.vmem %s1656_s23, 1536 }
  0x7a   : > { %p1659_p2 = scmp.lt.s32.totalorder %s1657_s25, %s1651_s17 }
  0x7c   : > { %1040 = vrot.lane.b32.xlu0 %v1898_v2, %s1736_s30  ;;  %p1660_p13 = por %p1659_p2, %p1658_p10 }
  0x7d   : > { %1042 = vrot.lane.b32.xlu1 %v1584_v4, %s1736_s30 }
  0x7e   : > { %p1661_p0 = pnand %p1660_p13, %p1654_p12 }
  0x80   : > { %1038 = vrot.lane.b32.xlu0 %v1901_v3, %s1736_s30 }
  0x81   : > { %1044 = vrot.lane.b32.xlu1 %v1586_v5, %s1736_s30 }
  0x84   : > { %1156 = vrot.lane.b32.xlu0 %v1898_v2, %s1737_s4 }
  0x85   : > { %1158 = vrot.lane.b32.xlu1 %v1584_v4, %s1737_s4 }
  0x88   : > { %1154 = vrot.lane.b32.xlu0 %v1901_v3, %s1737_s4 }
  0x89   : > { %1160 = vrot.lane.b32.xlu1 %v1586_v5, %s1737_s4 }
  0x8c   : > { %1266 = vperm.xlu0 %1579, %v1262_v6  }
  0x8d   : > { %1271 = vperm.xlu1 %1580, %v1263_v7  }
  0xbe   : > { %v242_v8 = vpop.permute.xlu0 %241 }
  0xbf   : > { %v240_v9 = vpop.permute.xlu1 %239 }
  0xc0   : > { %v248_v14 = vsel %vm247_vm1, %v240_v9, %v242_v8 }
  0xc2   : > { %v244_v10 = vpop.permute.xlu0 %243 }
  0xc3   : > { %v246_v11 = vpop.permute.xlu1 %245  ;;  %v249_v12 = vsel %vm247_vm1, %v242_v8, %v244_v10  ;;  %v1595_v8 = vld [vmem:[#allocation5 + $0x38] sm:$0xff]  }
  0xc4   : > { %272 = vmatprep.subr.bf16.mxu0 %v249_v12  ;;  %v250_v13 = vsel %vm247_vm1, %v244_v10, %v246_v11  ;;  %v1596_v11 = vld [vmem:[#allocation5 + $0x40] sm:$0xff]  }
  0xc5   : > { %1450 = vmatpush3.bf16.msra.mxu1 %v250_v13  ;;  %273 = vmatpush1.bf16.msra.mxu0 %v248_v14 }
  0xc6   : > { %v461_v17 = vpop.permute.xlu0 %460  ;;  %380 = vmatprep.subr.bf16.mxu0 %v1898_v2  ;;  %1455 = vmatprep.subr.bf16.mxu1 %v1727_v0 }
  0xc7   : > { %v463_v18 = vpop.permute.xlu1 %462 }
  0xc8   : > { %1452 = vmatmul.mubr.msk.bf16.vlgmr.msra.gmra.mxu1 %vm254_vm2, %v1587_v15  ;;  %1398 = vmatmul.mubr.msk.bf16.vlgmr.msra.gmra.mxu0 %vm254_vm2, %v1587_v15  ;;  %v468_v19 = vsel %vm466_vm3, %v461_v17, %v463_v18 }
  0xc9   : > { %381 = vmatpush1.bf16.msra.mxu0 %v1901_v3  ;;  %1456 = vmatpush3.bf16.msra.mxu1 %v1588_v16 }
  0xca   : > { %v459_v20 = vpop.permute.xlu0 %458  ;;  %490 = vmatprep.subr.bf16.mxu0 %v468_v19  ;;  %1457 = vmatprep.mubr.msk.bf16.mxu1 %vm1728_vm0, %v1727_v0 }
  0xcb   : > { %v465_v21 = vpop.permute.xlu1 %464  ;;  %1461 = vmatprep.subr.bf16.mxu1 %v1727_v0  ;;  %398 = vmatprep.mubr.bf16.mxu0 %v1729_v1  ;;  %v467_v23 = vsel %vm466_vm3, %v459_v20, %v461_v17 }
  0xcc   : > { %v469_v24 = vsel %vm466_vm3, %v463_v18, %v465_v21 }
  0xce   : > { %v577_v25 = vpop.permute.xlu0 %576 }
  0xcf   : > { %v579_v26 = vpop.permute.xlu1 %578 }
  0xd0   : > { %1458 = vmatmul.mubr.msk.bf16.vlgmr.msra.gmra.mxu1 %vm254_vm2, %v1589_v22  ;;  %1404 = vmatmul.mubr.msk.bf16.vlgmr.msra.gmra.mxu0 %vm254_vm2, %v1589_v22  ;;  %v584_v27 = vsel %vm582_vm4, %v577_v25, %v579_v26 }
  0xd1   : > { %1462 = vmatpush3.bf16.msra.mxu1 %v469_v24  ;;  %491 = vmatpush1.bf16.msra.mxu0 %v467_v23 }
  0xd2   : > { %v575_v28 = vpop.permute.xlu0 %574  ;;  %606 = vmatprep.subr.bf16.mxu0 %v584_v27  ;;  %1463 = vmatprep.mubr.msk.bf16.mxu1 %vm1728_vm0, %v1727_v0 }
  0xd3   : > { %v581_v29 = vpop.permute.xlu1 %580  ;;  %1467 = vmatprep.subr.bf16.mxu1 %v1727_v0  ;;  %508 = vmatprep.mubr.bf16.mxu0 %v1729_v1  ;;  %v583_v31 = vsel %vm582_vm4, %v575_v28, %v577_v25 }
  0xd4   : > { %v585_v32 = vsel %vm582_vm4, %v579_v26, %v581_v29 }
  0xd6   : > { %v693_v33 = vpop.permute.xlu0 %692 }
  0xd7   : > { %v695_v34 = vpop.permute.xlu1 %694 }
  0xd8   : > { %1464 = vmatmul.mubr.msk.bf16.vlgmr.msra.gmra.mxu1 %vm254_vm2, %v1590_v30  ;;  %1407 = vmatmul.mubr.msk.bf16.vlgmr.msra.gmra.mxu0 %vm254_vm2, %v1590_v30  ;;  %v700_v35 = vsel %vm698_vm5, %v693_v33, %v695_v34 }
  0xd9   : > { %1468 = vmatpush3.bf16.msra.mxu1 %v585_v32  ;;  %607 = vmatpush1.bf16.msra.mxu0 %v583_v31 }
  0xda   : > { %v691_v36 = vpop.permute.xlu0 %690  ;;  %722 = vmatprep.subr.bf16.mxu0 %v700_v35  ;;  %1469 = vmatprep.mubr.msk.bf16.mxu1 %vm1728_vm0, %v1727_v0 }
  0xdb   : > { %v697_v37 = vpop.permute.xlu1 %696  ;;  %1473 = vmatprep.subr.bf16.mxu1 %v1727_v0  ;;  %624 = vmatprep.mubr.bf16.mxu0 %v1729_v1  ;;  %v699_v39 = vsel %vm698_vm5, %v691_v36, %v693_v33 }
  0xdc   : > { %v701_v40 = vsel %vm698_vm5, %v695_v34, %v697_v37 }
  0xde   : > { %v809_v41 = vpop.permute.xlu0 %808 }
  0xdf   : > { %v811_v42 = vpop.permute.xlu1 %810 }
  0xe0   : > { %1470 = vmatmul.mubr.msk.bf16.vlgmr.msra.gmra.mxu1 %vm254_vm2, %v1591_v38  ;;  %1410 = vmatmul.mubr.msk.bf16.vlgmr.msra.gmra.mxu0 %vm254_vm2, %v1591_v38  ;;  %v816_v43 = vsel %vm814_vm6, %v809_v41, %v811_v42 }
  0xe1   : > { %1474 = vmatpush3.bf16.msra.mxu1 %v701_v40  ;;  %723 = vmatpush1.bf16.msra.mxu0 %v699_v39 }
  0xe2   : > { %v807_v44 = vpop.permute.xlu0 %806  ;;  %838 = vmatprep.subr.bf16.mxu0 %v816_v43  ;;  %1475 = vmatprep.mubr.msk.bf16.mxu1 %vm1728_vm0, %v1727_v0 }
  0xe3   : > { %v813_v45 = vpop.permute.xlu1 %812  ;;  %1479 = vmatprep.subr.bf16.mxu1 %v1727_v0  ;;  %740 = vmatprep.mubr.bf16.mxu0 %v1729_v1  ;;  %v815_v47 = vsel %vm814_vm6, %v807_v44, %v809_v41 }
  0xe4   : > { %v817_v48 = vsel %vm814_vm6, %v811_v42, %v813_v45 }
  0xe6   : > { %v925_v49 = vpop.permute.xlu0 %924 }
  0xe7   : > { %v927_v50 = vpop.permute.xlu1 %926 }
  0xe8   : > { %1476 = vmatmul.mubr.msk.bf16.vlgmr.msra.gmra.mxu1 %vm254_vm2, %v1592_v46  ;;  %1413 = vmatmul.mubr.msk.bf16.vlgmr.msra.gmra.mxu0 %vm254_vm2, %v1592_v46  ;;  %v932_v51 = vsel %vm930_vm7, %v925_v49, %v927_v50 }
  0xe9   : > { %1480 = vmatpush3.bf16.msra.mxu1 %v817_v48  ;;  %839 = vmatpush1.bf16.msra.mxu0 %v815_v47 }
  0xea   : > { %v923_v52 = vpop.permute.xlu0 %922  ;;  %954 = vmatprep.subr.bf16.mxu0 %v932_v51  ;;  %1481 = vmatprep.mubr.msk.bf16.mxu1 %vm1728_vm0, %v1727_v0 }
  0xeb   : > { %v929_v53 = vpop.permute.xlu1 %928  ;;  %1485 = vmatprep.subr.bf16.mxu1 %v1727_v0  ;;  %856 = vmatprep.mubr.bf16.mxu0 %v1729_v1  ;;  %v931_v55 = vsel %vm930_vm7, %v923_v52, %v925_v49 }
  0xec   : > { %v933_v56 = vsel %vm930_vm7, %v927_v50, %v929_v53 }
  0xee   : > { %v1041_v57 = vpop.permute.xlu0 %1040 }
  0xef   : > { %v1043_v58 = vpop.permute.xlu1 %1042 }
  0xf0   : > { %1482 = vmatmul.mubr.msk.bf16.vlgmr.msra.gmra.mxu1 %vm254_vm2, %v1593_v54  ;;  %1416 = vmatmul.mubr.msk.bf16.vlgmr.msra.gmra.mxu0 %vm254_vm2, %v1593_v54  ;;  %v1048_v59 = vsel %vm1046_vm8, %v1041_v57, %v1043_v58 }
  0xf1   : > { %1486 = vmatpush3.bf16.msra.mxu1 %v933_v56  ;;  %955 = vmatpush1.bf16.msra.mxu0 %v931_v55 }
  0xf2   : > { %v1039_v60 = vpop.permute.xlu0 %1038  ;;  %1070 = vmatprep.subr.bf16.mxu0 %v1048_v59  ;;  %1487 = vmatprep.mubr.msk.bf16.mxu1 %vm1728_vm0, %v1727_v0 }
  0xf3   : > { %v1045_v61 = vpop.permute.xlu1 %1044  ;;  %1491 = vmatprep.subr.bf16.mxu1 %v1727_v0  ;;  %972 = vmatprep.mubr.bf16.mxu0 %v1729_v1  ;;  %v1047_v63 = vsel %vm1046_vm8, %v1039_v60, %v1041_v57 }
  0xf4   : > { %v1049_v2 = vsel %vm1046_vm8, %v1043_v58, %v1045_v61 }
  0xf6   : > { %v1157_v3 = vpop.permute.xlu0 %1156 }
  0xf7   : > { %v1159_v4 = vpop.permute.xlu1 %1158 }
  0xf8   : > { %1488 = vmatmul.mubr.msk.bf16.vlgmr.msra.gmra.mxu1 %vm254_vm2, %v1594_v62  ;;  %1419 = vmatmul.mubr.msk.bf16.vlgmr.msra.gmra.mxu0 %vm254_vm2, %v1594_v62  ;;  %v1164_v5 = vsel %vm1162_vm9, %v1157_v3, %v1159_v4 }
  0xf9   : > { %1492 = vmatpush3.bf16.msra.mxu1 %v1049_v2  ;;  %1071 = vmatpush1.bf16.msra.mxu0 %v1047_v63 }
  0xfa   : > { %1186 = vmatprep.subr.bf16.mxu0 %v1164_v5  ;;  %1493 = vmatprep.mubr.msk.bf16.mxu1 %vm1728_vm0, %v1727_v0  ;;  %v1155_v6 = vpop.permute.xlu0 %1154 }
  0xfb   : > { %v1161_v7 = vpop.permute.xlu1 %1160  ;;  %1497 = vmatprep.subr.bf16.mxu1 %v1727_v0  ;;  %1088 = vmatprep.mubr.bf16.mxu0 %v1729_v1  ;;  %v1163_v9 = vsel %vm1162_vm9, %v1155_v6, %v1157_v3 }
  0xfc   : > { %v1165_v10 = vsel %vm1162_vm9, %v1159_v4, %v1161_v7 }
 0x100   : > { %1494 = vmatmul.mubr.msk.bf16.vlgmr.msra.gmra.mxu1 %vm254_vm2, %v1595_v8  ;;  %1422 = vmatmul.mubr.msk.bf16.vlgmr.msra.gmra.mxu0 %vm254_vm2, %v1595_v8 }
 0x101   : > { %1498 = vmatpush3.bf16.msra.mxu1 %v1165_v10  ;;  %1187 = vmatpush1.bf16.msra.mxu0 %v1163_v9 }
 0x102   : > { %1499 = vmatprep.mubr.msk.bf16.mxu1 %vm1728_vm0, %v1727_v0  ;;  %1204 = vmatprep.mubr.bf16.mxu0 %v1729_v1 }
 0x108   : > { %1500 = vmatmul.mubr.msk.bf16.vlgmr.msra.gmra.mxu1 %vm254_vm2, %v1596_v11  ;;  %1425 = vmatmul.mubr.msk.bf16.vlgmr.msra.gmra.mxu0 %vm254_vm2, %v1596_v11 }
 0x188   : > { %v335_v12 = vpop.f32.mrf.mxu1  ;;  %v292_v13 = vpop.f32.mrf.mxu0 }
 0x18a   : > { %v1453_v14 = vpop.f32.mrf.mxu1  ;;  %v294_v15 = vpop.f32.mrf.mxu0 }
 0x18c   : > { %v338_v16 = vpop.f32.mrf.mxu1  ;;  %v296_v17 = vpop.f32.mrf.mxu0 }
 0x18e   : > { %v1454_v18 = vpop.f32.mrf.mxu1  ;;  %v298_v19 = vpop.f32.mrf.mxu0 }
 0x190   : > { %v443_v20 = vpop.f32.mrf.mxu1  ;;  %v400_v21 = vpop.f32.mrf.mxu0 }
 0x191   : > { %v444_v62 = vadd.f32 %v443_v20, %v335_v12  ;;  %v401_v63 = vadd.f32 %v400_v21, %v292_v13 }
 0x192   : > { %v1459_v22 = vpop.f32.mrf.mxu1  ;;  %v402_v23 = vpop.f32.mrf.mxu0 }
 0x193   : > { %v403_v4 = vadd.f32 %v402_v23, %v294_v15 }
 0x194   : > { %v446_v0 = vpop.f32.mrf.mxu1  ;;  %v404_v24 = vpop.f32.mrf.mxu0 }
 0x195   : > { %v447_v7 = vadd.f32 %v446_v0, %v338_v16  ;;  %v405_v10 = vadd.f32 %v404_v24, %v296_v17 }
 0x196   : > { %v1460_v1 = vpop.f32.mrf.mxu1  ;;  %v406_v25 = vpop.f32.mrf.mxu0 }
 0x197   : > { %v407_v22 = vadd.f32 %v406_v25, %v298_v19 }
 0x198   : > { %v553_v26 = vpop.f32.mrf.mxu1  ;;  %v510_v27 = vpop.f32.mrf.mxu0 }
 0x199   : > { %v562_v5 = vadd.f32 %v553_v26, %v444_v62  ;;  %v560_v6 = vadd.f32 %v510_v27, %v401_v63  ;;  %v1272_v62 = vpop.permute.xlu1 %1271 }
 0x19a   : > { %v1465_v28 = vpop.f32.mrf.mxu1  ;;  %v512_v29 = vpop.f32.mrf.mxu0 }
 0x19b   : > { %v561_v11 = vadd.f32 %v512_v29, %v403_v4 }
 0x19c   : > { %v556_v30 = vpop.f32.mrf.mxu1  ;;  %v514_v31 = vpop.f32.mrf.mxu0 }
 0x19d   : > { %v565_v1 = vadd.f32 %v556_v30, %v447_v7 }
 0x19e   : > { %v1466_v32 = vpop.f32.mrf.mxu1  ;;  %v516_v33 = vpop.f32.mrf.mxu0 }
 0x19f   : > { %v564_v20 = vadd.f32 %v516_v33, %v407_v22 }
 0x1a0   : > { %v669_v34 = vpop.f32.mrf.mxu1  ;;  %v626_v35 = vpop.f32.mrf.mxu0 }
 0x1a1   : > { %v678_v14 = vadd.f32 %v669_v34, %v562_v5  ;;  %v676_v18 = vadd.f32 %v626_v35, %v560_v6 }
 0x1a2   : > { %v1471_v36 = vpop.f32.mrf.mxu1  ;;  %v628_v37 = vpop.f32.mrf.mxu0 }
 0x1a3   : > { %v563_v36 = vadd.f32 %v514_v31, %v405_v10 }
 0x1a4   : > { %v672_v38 = vpop.f32.mrf.mxu1  ;;  %v630_v39 = vpop.f32.mrf.mxu0 }
 0x1a5   : > { %v681_v21 = vadd.f32 %v672_v38, %v565_v1  ;;  %v679_v26 = vadd.f32 %v630_v39, %v563_v36 }
 0x1a6   : > { %v1472_v40 = vpop.f32.mrf.mxu1  ;;  %v632_v41 = vpop.f32.mrf.mxu0 }
 0x1a7   : > { %v677_v40 = vadd.f32 %v628_v37, %v561_v11  ;;  %v680_v24 = vadd.f32 %v632_v41, %v564_v20 }
 0x1a8   : > { %v785_v42 = vpop.f32.mrf.mxu1  ;;  %v742_v43 = vpop.f32.mrf.mxu0 }
 0x1a9   : > { %v794_v12 = vadd.f32 %v785_v42, %v678_v14  ;;  %v792_v13 = vadd.f32 %v742_v43, %v676_v18 }
 0x1aa   : > { %v1477_v44 = vpop.f32.mrf.mxu1  ;;  %v744_v45 = vpop.f32.mrf.mxu0 }
 0x1ab   : > { %v793_v16 = vadd.f32 %v744_v45, %v677_v40  ;;  %v1267_v45 = vpop.permute.xlu0 %1266 }
 0x1ac   : > { %v788_v46 = vpop.f32.mrf.mxu1  ;;  %v746_v47 = vpop.f32.mrf.mxu0 }
 0x1ad   : > { %v797_v27 = vadd.f32 %v788_v46, %v681_v21  ;;  %v795_v25 = vadd.f32 %v746_v47, %v679_v26 }
 0x1ae   : > { %v1478_v48 = vpop.f32.mrf.mxu1  ;;  %v748_v49 = vpop.f32.mrf.mxu0 }
 0x1af   : > { %v796_v35 = vadd.f32 %v748_v49, %v680_v24 }
 0x1b0   : > { %v901_v50 = vpop.f32.mrf.mxu1  ;;  %v858_v51 = vpop.f32.mrf.mxu0 }
 0x1b1   : > { %v910_v0 = vadd.f32 %v901_v50, %v794_v12  ;;  %v908_v17 = vadd.f32 %v858_v51, %v792_v13 }
 0x1b2   : > { %v1483_v52 = vpop.f32.mrf.mxu1  ;;  %v860_v53 = vpop.f32.mrf.mxu0 }
 0x1b3   : > { %v909_v30 = vadd.f32 %v860_v53, %v793_v16 }
 0x1b4   : > { %v904_v54 = vpop.f32.mrf.mxu1  ;;  %v862_v55 = vpop.f32.mrf.mxu0 }
 0x1b5   : > { %v913_v37 = vadd.f32 %v904_v54, %v797_v27  ;;  %v911_v38 = vadd.f32 %v862_v55, %v795_v25 }
 0x1b6   : > { %v1484_v56 = vpop.f32.mrf.mxu1  ;;  %v864_v57 = vpop.f32.mrf.mxu0 }
 0x1b7   : > { %v912_v48 = vadd.f32 %v864_v57, %v796_v35 }
 0x1b8   : > { %v1017_v58 = vpop.f32.mrf.mxu1  ;;  %v974_v59 = vpop.f32.mrf.mxu0 }
 0x1b9   : > { %v1026_v34 = vadd.f32 %v1017_v58, %v910_v0  ;;  %v1024_v31 = vadd.f32 %v974_v59, %v908_v17 }
 0x1ba   : > { %v1489_v60 = vpop.f32.mrf.mxu1  ;;  %v976_v61 = vpop.f32.mrf.mxu0 }
 0x1bb   : > { %v1025_v43 = vadd.f32 %v976_v61, %v909_v30 }
 0x1bc   : > { %v1020_v2 = vpop.f32.mrf.mxu1  ;;  %v978_v3 = vpop.f32.mrf.mxu0 }
 0x1bd   : > { %v1029_v50 = vadd.f32 %v1020_v2, %v913_v37  ;;  %v1027_v51 = vadd.f32 %v978_v3, %v911_v38 }
 0x1be   : > { %v1490_v8 = vpop.f32.mrf.mxu1  ;;  %v980_v9 = vpop.f32.mrf.mxu0 }
 0x1bf   : > { %v1028_v56 = vadd.f32 %v980_v9, %v912_v48 }
 0x1c0   : > { %v1133_v28 = vpop.f32.mrf.mxu1  ;;  %v1090_v32 = vpop.f32.mrf.mxu0 }
 0x1c1   : > { %v1142_v39 = vadd.f32 %v1133_v28, %v1026_v34  ;;  %v1140_v44 = vadd.f32 %v1090_v32, %v1024_v31 }
 0x1c2   : > { %v1495_v15 = vpop.f32.mrf.mxu1  ;;  %v1092_v23 = vpop.f32.mrf.mxu0 }
 0x1c3   : > { %v1141_v52 = vadd.f32 %v1092_v23, %v1025_v43 }
 0x1c4   : > { %v1136_v29 = vpop.f32.mrf.mxu1  ;;  %v1094_v19 = vpop.f32.mrf.mxu0 }
 0x1c5   : > { %v1145_v58 = vadd.f32 %v1136_v29, %v1029_v50  ;;  %v1143_v59 = vadd.f32 %v1094_v19, %v1027_v51 }
 0x1c6   : > { %v1496_v42 = vpop.f32.mrf.mxu1  ;;  %v1096_v33 = vpop.f32.mrf.mxu0 }
 0x1c7   : > { %v1144_v2 = vadd.f32 %v1096_v33, %v1028_v56 }
 0x1c8   : > { %v1249_v41 = vpop.f32.mrf.mxu1  ;;  %v1206_v46 = vpop.f32.mrf.mxu0 }
 0x1c9   : > { %v1258_v47 = vadd.f32 %v1249_v41, %v1142_v39  ;;  %v1256_v53 = vadd.f32 %v1206_v46, %v1140_v44 }
 0x1ca   : > { %v1501_v49 = vpop.f32.mrf.mxu1  ;;  %v1208_v54 = vpop.f32.mrf.mxu0 }
 0x1cb   : > { %v1274_v60 = vadd.f32 %v1267_v45, %v1256_v53  ;;  %v1276_v55 = vadd.f32 %v1267_v45, %v1258_v47  ;;  %v1257_v61 = vadd.f32 %v1208_v54, %v1141_v52 }
 0x1cc   : > { %v1252_v57 = vpop.f32.mrf.mxu1  ;;  %v1210_v63 = vpop.f32.mrf.mxu0 }
 0x1cd   : > { %1280 = vst [vmem:[%s203_s21] sm:$0xff] %v1274_v60  ;;  %1282 = vst [vmem:[%s203_s21 + $0x10] sm:$0xff] %v1276_v55  ;;  %v1275_v3 = vadd.f32 %v1267_v45, %v1257_v61  ;;  %v1261_v4 = vadd.f32 %v1252_v57, %v1145_v58  ;;  %v1259_v5 = vadd.f32 %v1210_v63, %v1143_v59 }
 0x1ce   : > { %v1502_v6 = vpop.f32.mrf.mxu1  ;;  %v1212_v7 = vpop.f32.mrf.mxu0 }
 0x1cf   : > { %1281 = vst [vmem:[%s203_s21 + $0x8] sm:$0xff] %v1275_v3  ;;  %v1277_v8 = vadd.f32 %v1272_v62, %v1259_v5  ;;  %v1279_v9 = vadd.f32 %v1272_v62, %v1261_v4  ;;  %v1260_v10 = vadd.f32 %v1212_v7, %v1144_v2 }
 0x1d1   : > { %1283 = vst [vmem:[%s203_s21 + $0x18] sm:$0xff] %v1277_v8  ;;  %1285 = vst [vmem:[%s203_s21 + $0x28] sm:$0xff] %v1279_v9  ;;  %v1278_v11 = vadd.f32 %v1272_v62, %v1260_v10 }
 0x1d3   : > { %1284 = vst [vmem:[%s203_s21 + $0x20] sm:$0xff] %v1278_v11 }
 0x1d4   : > { %1664 = shalt.err (!%p1661_p0)
}
 0x1d5   : > { %s1665_s30 = scalar_lea.hbm %s2008_s20, 768  ;;  %s1669_s8 = scalar_lea.hbm %s2054_s3, 1536 }
 0x1d6   : > { %p1666_p5 = scmp.ne.s32.totalorder %s2008_s20, %s1665_s30  ;;  %p1670_p4 = scmp.lt.s32.totalorder %s2008_s20, %s2054_s3 }
 0x1d7   : > { %p1671_p6 = scmp.lt.s32.totalorder %s1669_s8, %s1665_s30 }
 0x1d8   : > { %p1667_p9 = pnand %p1666_p5, %p2070_p11 }
 0x1d9   : > { %p1672_p8 = por %p1671_p6, %p1670_p4 }
 0x1da   : > { %p1668_p1 = pneg %p1667_p9 }
 0x1dc   : > { %p1673_p3 = pnand %p1672_p8, %p1668_p1 }
 0x1de   : > { %1676 = shalt.err (!%p1673_p3)
}
 0x1df   : > { %s1739_s11 = smov 384   ;;  %s1740_s21 = smov 24  }
 0x1e0   : > { %1511 = dma.vmem_to_hbm [thread:$0]  (%p2070_p11), %s2003_s27, 768, %s2008_s20, %s1287_s16, %s1739_s11, %s1739_s11, %s1740_s21  }
 0x1e1 PF: > { %s1315_s28 = sand.u32 1, %s1707_s12   ;;  %p2071_p7 = scmp.ne.s32.totalorder %s2060_s19, 0 }
 0x1e2   : > { %p2072_p12 = scmp.ge.s32.totalorder %s1719_s15, 2  ;;  %s1316_s29 = scalar_lea.sflag [#allocation4], %s1315_s28 }
 0x1e4   : > { %p1522_p10 = pnand %p2072_p12, %p2071_p7 }
 0x1e6   : > { %p1523_p2 = pneg %p1522_p10 }
 0x1e8   : > { %1702 = dma.done.wait (%p1523_p2), %s1316_s29, 768  }
 0x1e9   : > { %1704 = vsyncadd (%p1523_p2), %s1316_s29, 4294966528  ;;  %p17_p13 = scmp.ge.s32.totalorder %s1815_s24, 4   ;;  %s2073_s12 = smov %s1711_s13 }
 0x1ea   : > { %s2074_s13 = smov %s1715_s14  ;;  %s2075_s14 = smov %s1832_s5 }
 0x1eb   : > { %s2076_s15 = smov %s1815_s24  ;;  %19 = sbr.rel (!%p17_p13) target bundleno = 6 (0x6), region = 89 }
 0x1f0   :  { %1321 = vsyncpa [#allocation3], 1 }
 0x1f1   :  { %1323 = vsyncpa [#allocation3 + $0x1], 1 }
 0x1f2   :  { %1324 = vsyncpa [#allocation6], 1 }
 0x1f3   :  { %1325 = vsyncpa [#allocation4], 1 }
 0x1f4   :  { %1327 = vsyncpa [#allocation4 + $0x1], 1 }

</bundles_post_ra>
